<compile_context>
chip_gen: v5e
topology: v5e:2x2
jax: 0.10.0
libtpu: 0.0.40
codegen_flags: <defaults>
</compile_context>

<pallas_src>
import functools

import jax
import jax.numpy as jnp
from jax import lax
from jax.experimental import pallas as pl
from jax.experimental.pallas import tpu as pltpu

BAG_BLOCK = 8  # bags (output rows) per grid step -> full (8, 128) vreg tiles


def _bow_vmem_kernel(idx_ref, table_ref, out_ref, *, L, inv_len):
    """Fast path: full embedding table resident in VMEM, gather rows in-kernel.

    idx_ref:   (B_pad*L,) int32 flat bag indices in SMEM (scalar prefetch)
    table_ref: (V, D) embedding table in VMEM (fetched once; block idx constant)
    out_ref:   (BAG_BLOCK, D) f32 output tile for this bag block
    """
    bag_block, D = out_ref.shape
    bb = pl.program_id(0)
    base = bb * (bag_block * L)
    unroll = L <= 16

    for r in range(bag_block):  # static loop over the 8 bags of this tile
        def body(l, acc, r=r):
            idx = idx_ref[base + r * L + l]
            return acc + table_ref[pl.ds(idx, 1), :].astype(jnp.float32)

        acc = lax.fori_loop(0, L, body, jnp.zeros((1, D), jnp.float32),
                            unroll=unroll)
        out_ref[pl.ds(r, 1), :] = acc * inv_len


def _bow_stream_kernel(idx_ref, table_hbm, out_ref, rows, sems, *,
                       L, n_slots, inv_len):
    """Streaming path: table in HBM, manual multi-slot DMA ring of row gathers.

    idx_ref:   (B_pad*L,) int32 flat bag indices in SMEM (scalar prefetch)
    table_hbm: (V, D) embedding table left in HBM (memory_space=pl.ANY)
    out_ref:   (BAG_BLOCK, D) f32 output tile (doubles as the accumulator)
    rows:      (n_slots, BAG_BLOCK, D) VMEM ring of gathered rows
    sems:      (n_slots, BAG_BLOCK) DMA semaphores (one per in-flight row fetch)
    """
    bag_block, D = out_ref.shape
    bb = pl.program_id(0)
    base = bb * (bag_block * L)
    unroll = L <= 16

    def fetch(l, slot):
        # Issue BAG_BLOCK row DMAs (one per bag) for column l into ring slot.
        for r in range(bag_block):
            row = idx_ref[base + r * L + l]
            pltpu.make_async_copy(
                table_hbm.at[pl.ds(row, 1), :],
                rows.at[slot, pl.ds(r, 1), :],
                sems.at[slot, r],
            ).start()

    def wait_slot(slot):
        for r in range(bag_block):
            pltpu.make_async_copy(
                table_hbm.at[pl.ds(0, 1), :],          # shape placeholder for wait
                rows.at[slot, pl.ds(r, 1), :],
                sems.at[slot, r],
            ).wait()

    # Prime the ring: up to n_slots columns (BAG_BLOCK row fetches each) in flight.
    for l in range(min(n_slots, L)):
        fetch(l, l)

    out_ref[...] = jnp.zeros_like(out_ref)

    def body(l, carry):
        slot = l % n_slots
        wait_slot(slot)
        # Full (8, D) vreg accumulate; bf16 tables convert once per tile.
        out_ref[...] += rows[slot].astype(jnp.float32)

        @pl.when(l + n_slots < L)
        def _():
            fetch(l + n_slots, slot)

        return carry

    lax.fori_loop(0, L, body, 0, unroll=unroll)
    out_ref[...] *= inv_len


def bow_forward(idx, emb_table, *, n_slots=4, force_stream=False,
                vmem_table_bytes=4 * 1024 * 1024):
    """EmbeddingBag(mode='mean') forward.

    idx:       (B, L) integer bag indices, each in [0, V).
    emb_table: (V, D) embedding table (f32 or bf16; accumulation is f32).
               D should be a multiple of 128 for lane-dense stores.
    returns:   (B, D) float32 per-bag means.
    """
    B, L = idx.shape
    V, D = emb_table.shape
    inv_len = 1.0 / L

    # Pad the bag axis to a multiple of BAG_BLOCK so every grid step owns a full
    # (8, D) output tile. Index 0 is always valid; padded bags are dropped.
    B_pad = ((B + BAG_BLOCK - 1) // BAG_BLOCK) * BAG_BLOCK
    idx32 = idx.astype(jnp.int32)
    if B_pad != B:
        idx32 = jnp.concatenate(
            [idx32, jnp.zeros((B_pad - B, L), jnp.int32)], axis=0)
    idx_flat = idx32.reshape(B_pad * L)  # 1-D scalar prefetch (SMEM-friendly)

    grid = (B_pad // BAG_BLOCK,)
    out_shape = jax.ShapeDtypeStruct((B_pad, D), jnp.float32)
    out_spec = pl.BlockSpec((BAG_BLOCK, D), lambda b, idx_ref: (b, 0))
    params = pltpu.CompilerParams(dimension_semantics=("parallel",))

    table_bytes = V * D * emb_table.dtype.itemsize
    if (not force_stream) and table_bytes <= vmem_table_bytes:
        # Small-table fast path: whole table resident in VMEM (fetched once,
        # constant block index across the grid), rows gathered in-kernel.
        out = pl.pallas_call(
            functools.partial(_bow_vmem_kernel, L=L, inv_len=inv_len),
            out_shape=out_shape,
            grid_spec=pltpu.PrefetchScalarGridSpec(
                num_scalar_prefetch=1,
                grid=grid,
                in_specs=[pl.BlockSpec((V, D), lambda b, idx_ref: (0, 0))],
                out_specs=out_spec,
            ),
            compiler_params=params,
        )(idx_flat, emb_table)
    else:
        # Large-table streaming path: manual DMA ring gather from HBM.
        n_slots_eff = max(1, min(n_slots, L))
        out = pl.pallas_call(
            functools.partial(_bow_stream_kernel, L=L, n_slots=n_slots_eff,
                              inv_len=inv_len),
            out_shape=out_shape,
            grid_spec=pltpu.PrefetchScalarGridSpec(
                num_scalar_prefetch=1,
                grid=grid,
                in_specs=[pl.BlockSpec(memory_space=pl.ANY)],
                out_specs=out_spec,
                scratch_shapes=[
                    pltpu.VMEM((n_slots_eff, BAG_BLOCK, D), emb_table.dtype),
                    pltpu.SemaphoreType.DMA((n_slots_eff, BAG_BLOCK)),
                ],
            ),
            compiler_params=params,
        )(idx_flat, emb_table)

    return out[:B] if B_pad != B else out


if __name__ == "__main__":
    # Small shapes consistent with the module's forward (2-D index input).
    vocab_size, embedding_dim = 1000, 128   # D multiple of 128 -> lane-dense stores
    batch, seq = 12, 8                      # batch not a multiple of 8: exercises padding

    key = jax.random.PRNGKey(0)
    k_emb, k_idx = jax.random.split(key)

    # torch.nn.EmbeddingBag default init: N(0, 1).
    emb_table = jax.random.normal(k_emb, (vocab_size, embedding_dim), jnp.float32)
    x = jax.random.randint(k_idx, (batch, seq), 0, vocab_size, dtype=jnp.int32)

    # Reference: plain-JAX EmbeddingBag(mean) semantics.
    ref = jnp.mean(emb_table[x], axis=1)

    # Exercise both paths: VMEM-resident table fast path and HBM DMA-ring path.
    out_fast = jax.block_until_ready(bow_forward(x, emb_table))
    out_stream = jax.block_until_ready(bow_forward(x, emb_table, force_stream=True))

    assert out_fast.shape == (batch, embedding_dim)
    assert jnp.allclose(out_fast, ref, atol=1e-5, rtol=1e-5), float(
        jnp.max(jnp.abs(out_fast - ref)))
    assert jnp.allclose(out_stream, ref, atol=1e-5, rtol=1e-5), float(
        jnp.max(jnp.abs(out_stream - ref)))

    print("KERNEL_OK")
</pallas_src>

<mosaic_0001>
module attributes {stable_mosaic.version = 11 : i64} {
  func.func @_bow_vmem_kernel(%arg0: i32, %arg1: memref<128xi32, #tpu.memory_space<smem>>, %arg2: memref<1000x128xf32, #tpu.memory_space<vmem>>, %arg3: memref<8x128xf32, #tpu.memory_space<vmem>>) attributes {dimension_semantics = [#tpu.dimension_semantics<parallel>], iteration_bounds = array<i64: 2>, scalar_prefetch = 1 : i64, scratch_operands = 0 : i64, tpu.core_type = #tpu.core_type<tc>, window_params = [{pipeline_mode = #tpu.pipeline_mode<synchronous>, transform_indices = @transform_0, window_bounds = array<i64: 1000, 128>}, {transform_indices = @transform_1, window_bounds = array<i64: 8, 128>}]} {
    %c64_i32 = arith.constant 64 : i32
    %0 = arith.muli %arg0, %c64_i32 : i32
    %cst = arith.constant 0.000000e+00 : f32
    %1 = vector.broadcast %cst : f32 to vector<1x128xf32>
    %c0_i32 = arith.constant 0 : i32
    %c0_i32_0 = arith.constant 0 : i32
    %2 = arith.addi %0, %c0_i32_0 : i32
    %3 = arith.addi %2, %c0_i32 : i32
    %4 = arith.index_cast %3 : i32 to index
    %5 = memref.load %arg1[%4] : memref<128xi32, #tpu.memory_space<smem>>
    %6 = arith.index_cast %5 : i32 to index
    %c0 = arith.constant 0 : index
    %7 = vector.load %arg2[%6, %c0] : memref<1000x128xf32, #tpu.memory_space<vmem>>, vector<1x128xf32>
    %8 = arith.addf %1, %7 : vector<1x128xf32>
    %c1_i32 = arith.constant 1 : i32
    %c0_i32_1 = arith.constant 0 : i32
    %9 = arith.addi %0, %c0_i32_1 : i32
    %10 = arith.addi %9, %c1_i32 : i32
    %11 = arith.index_cast %10 : i32 to index
    %12 = memref.load %arg1[%11] : memref<128xi32, #tpu.memory_space<smem>>
    %13 = arith.index_cast %12 : i32 to index
    %c0_2 = arith.constant 0 : index
    %14 = vector.load %arg2[%13, %c0_2] : memref<1000x128xf32, #tpu.memory_space<vmem>>, vector<1x128xf32>
    %15 = arith.addf %8, %14 : vector<1x128xf32>
    %c2_i32 = arith.constant 2 : i32
    %c0_i32_3 = arith.constant 0 : i32
    %16 = arith.addi %0, %c0_i32_3 : i32
    %17 = arith.addi %16, %c2_i32 : i32
    %18 = arith.index_cast %17 : i32 to index
    %19 = memref.load %arg1[%18] : memref<128xi32, #tpu.memory_space<smem>>
    %20 = arith.index_cast %19 : i32 to index
    %c0_4 = arith.constant 0 : index
    %21 = vector.load %arg2[%20, %c0_4] : memref<1000x128xf32, #tpu.memory_space<vmem>>, vector<1x128xf32>
    %22 = arith.addf %15, %21 : vector<1x128xf32>
    %c3_i32 = arith.constant 3 : i32
    %c0_i32_5 = arith.constant 0 : i32
    %23 = arith.addi %0, %c0_i32_5 : i32
    %24 = arith.addi %23, %c3_i32 : i32
    %25 = arith.index_cast %24 : i32 to index
    %26 = memref.load %arg1[%25] : memref<128xi32, #tpu.memory_space<smem>>
    %27 = arith.index_cast %26 : i32 to index
    %c0_6 = arith.constant 0 : index
    %28 = vector.load %arg2[%27, %c0_6] : memref<1000x128xf32, #tpu.memory_space<vmem>>, vector<1x128xf32>
    %29 = arith.addf %22, %28 : vector<1x128xf32>
    %c4_i32 = arith.constant 4 : i32
    %c0_i32_7 = arith.constant 0 : i32
    %30 = arith.addi %0, %c0_i32_7 : i32
    %31 = arith.addi %30, %c4_i32 : i32
    %32 = arith.index_cast %31 : i32 to index
    %33 = memref.load %arg1[%32] : memref<128xi32, #tpu.memory_space<smem>>
    %34 = arith.index_cast %33 : i32 to index
    %c0_8 = arith.constant 0 : index
    %35 = vector.load %arg2[%34, %c0_8] : memref<1000x128xf32, #tpu.memory_space<vmem>>, vector<1x128xf32>
    %36 = arith.addf %29, %35 : vector<1x128xf32>
    %c5_i32 = arith.constant 5 : i32
    %c0_i32_9 = arith.constant 0 : i32
    %37 = arith.addi %0, %c0_i32_9 : i32
    %38 = arith.addi %37, %c5_i32 : i32
    %39 = arith.index_cast %38 : i32 to index
    %40 = memref.load %arg1[%39] : memref<128xi32, #tpu.memory_space<smem>>
    %41 = arith.index_cast %40 : i32 to index
    %c0_10 = arith.constant 0 : index
    %42 = vector.load %arg2[%41, %c0_10] : memref<1000x128xf32, #tpu.memory_space<vmem>>, vector<1x128xf32>
    %43 = arith.addf %36, %42 : vector<1x128xf32>
    %c6_i32 = arith.constant 6 : i32
    %c0_i32_11 = arith.constant 0 : i32
    %44 = arith.addi %0, %c0_i32_11 : i32
    %45 = arith.addi %44, %c6_i32 : i32
    %46 = arith.index_cast %45 : i32 to index
    %47 = memref.load %arg1[%46] : memref<128xi32, #tpu.memory_space<smem>>
    %48 = arith.index_cast %47 : i32 to index
    %c0_12 = arith.constant 0 : index
    %49 = vector.load %arg2[%48, %c0_12] : memref<1000x128xf32, #tpu.memory_space<vmem>>, vector<1x128xf32>
    %50 = arith.addf %43, %49 : vector<1x128xf32>
    %c7_i32 = arith.constant 7 : i32
    %c0_i32_13 = arith.constant 0 : i32
    %51 = arith.addi %0, %c0_i32_13 : i32
    %52 = arith.addi %51, %c7_i32 : i32
    %53 = arith.index_cast %52 : i32 to index
    %54 = memref.load %arg1[%53] : memref<128xi32, #tpu.memory_space<smem>>
    %55 = arith.index_cast %54 : i32 to index
    %c0_14 = arith.constant 0 : index
    %56 = vector.load %arg2[%55, %c0_14] : memref<1000x128xf32, #tpu.memory_space<vmem>>, vector<1x128xf32>
    %57 = arith.addf %50, %56 : vector<1x128xf32>
    %c8_i32 = arith.constant 8 : i32
    %cst_15 = arith.constant 1.250000e-01 : f32
    %58 = vector.broadcast %cst_15 : f32 to vector<1x128xf32>
    %59 = arith.mulf %57, %58 : vector<1x128xf32>
    %c0_16 = arith.constant 0 : index
    %c0_17 = arith.constant 0 : index
    %60 = vector.load %arg3[%c0_16, %c0_17] : memref<8x128xf32, #tpu.memory_space<vmem>>, vector<1x128xf32>
    tpu.vector_store %arg3[%c0_16, %c0_17], %59 {strides = array<i32>} : memref<8x128xf32, #tpu.memory_space<vmem>>, vector<1x128xf32>,
    %cst_18 = arith.constant 0.000000e+00 : f32
    %61 = vector.broadcast %cst_18 : f32 to vector<1x128xf32>
    %c0_i32_19 = arith.constant 0 : i32
    %c8_i32_20 = arith.constant 8 : i32
    %62 = arith.addi %0, %c8_i32_20 : i32
    %63 = arith.addi %62, %c0_i32_19 : i32
    %64 = arith.index_cast %63 : i32 to index
    %65 = memref.load %arg1[%64] : memref<128xi32, #tpu.memory_space<smem>>
    %66 = arith.index_cast %65 : i32 to index
    %c0_21 = arith.constant 0 : index
    %67 = vector.load %arg2[%66, %c0_21] : memref<1000x128xf32, #tpu.memory_space<vmem>>, vector<1x128xf32>
    %68 = arith.addf %61, %67 : vector<1x128xf32>
    %c1_i32_22 = arith.constant 1 : i32
    %c8_i32_23 = arith.constant 8 : i32
    %69 = arith.addi %0, %c8_i32_23 : i32
    %70 = arith.addi %69, %c1_i32_22 : i32
    %71 = arith.index_cast %70 : i32 to index
    %72 = memref.load %arg1[%71] : memref<128xi32, #tpu.memory_space<smem>>
    %73 = arith.index_cast %72 : i32 to index
    %c0_24 = arith.constant 0 : index
    %74 = vector.load %arg2[%73, %c0_24] : memref<1000x128xf32, #tpu.memory_space<vmem>>, vector<1x128xf32>
    %75 = arith.addf %68, %74 : vector<1x128xf32>
    %c2_i32_25 = arith.constant 2 : i32
    %c8_i32_26 = arith.constant 8 : i32
    %76 = arith.addi %0, %c8_i32_26 : i32
    %77 = arith.addi %76, %c2_i32_25 : i32
    %78 = arith.index_cast %77 : i32 to index
    %79 = memref.load %arg1[%78] : memref<128xi32, #tpu.memory_space<smem>>
    %80 = arith.index_cast %79 : i32 to index
    %c0_27 = arith.constant 0 : index
    %81 = vector.load %arg2[%80, %c0_27] : memref<1000x128xf32, #tpu.memory_space<vmem>>, vector<1x128xf32>
    %82 = arith.addf %75, %81 : vector<1x128xf32>
    %c3_i32_28 = arith.constant 3 : i32
    %c8_i32_29 = arith.constant 8 : i32
    %83 = arith.addi %0, %c8_i32_29 : i32
    %84 = arith.addi %83, %c3_i32_28 : i32
    %85 = arith.index_cast %84 : i32 to index
    %86 = memref.load %arg1[%85] : memref<128xi32, #tpu.memory_space<smem>>
    %87 = arith.index_cast %86 : i32 to index
    %c0_30 = arith.constant 0 : index
    %88 = vector.load %arg2[%87, %c0_30] : memref<1000x128xf32, #tpu.memory_space<vmem>>, vector<1x128xf32>
    %89 = arith.addf %82, %88 : vector<1x128xf32>
    %c4_i32_31 = arith.constant 4 : i32
    %c8_i32_32 = arith.constant 8 : i32
    %90 = arith.addi %0, %c8_i32_32 : i32
    %91 = arith.addi %90, %c4_i32_31 : i32
    %92 = arith.index_cast %91 : i32 to index
    %93 = memref.load %arg1[%92] : memref<128xi32, #tpu.memory_space<smem>>
    %94 = arith.index_cast %93 : i32 to index
    %c0_33 = arith.constant 0 : index
    %95 = vector.load %arg2[%94, %c0_33] : memref<1000x128xf32, #tpu.memory_space<vmem>>, vector<1x128xf32>
    %96 = arith.addf %89, %95 : vector<1x128xf32>
    %c5_i32_34 = arith.constant 5 : i32
    %c8_i32_35 = arith.constant 8 : i32
    %97 = arith.addi %0, %c8_i32_35 : i32
    %98 = arith.addi %97, %c5_i32_34 : i32
    %99 = arith.index_cast %98 : i32 to index
    %100 = memref.load %arg1[%99] : memref<128xi32, #tpu.memory_space<smem>>
    %101 = arith.index_cast %100 : i32 to index
    %c0_36 = arith.constant 0 : index
    %102 = vector.load %arg2[%101, %c0_36] : memref<1000x128xf32, #tpu.memory_space<vmem>>, vector<1x128xf32>
    %103 = arith.addf %96, %102 : vector<1x128xf32>
    %c6_i32_37 = arith.constant 6 : i32
    %c8_i32_38 = arith.constant 8 : i32
    %104 = arith.addi %0, %c8_i32_38 : i32
    %105 = arith.addi %104, %c6_i32_37 : i32
    %106 = arith.index_cast %105 : i32 to index
    %107 = memref.load %arg1[%106] : memref<128xi32, #tpu.memory_space<smem>>
    %108 = arith.index_cast %107 : i32 to index
    %c0_39 = arith.constant 0 : index
    %109 = vector.load %arg2[%108, %c0_39] : memref<1000x128xf32, #tpu.memory_space<vmem>>, vector<1x128xf32>
    %110 = arith.addf %103, %109 : vector<1x128xf32>
    %c7_i32_40 = arith.constant 7 : i32
    %c8_i32_41 = arith.constant 8 : i32
    %111 = arith.addi %0, %c8_i32_41 : i32
    %112 = arith.addi %111, %c7_i32_40 : i32
    %113 = arith.index_cast %112 : i32 to index
    %114 = memref.load %arg1[%113] : memref<128xi32, #tpu.memory_space<smem>>
    %115 = arith.index_cast %114 : i32 to index
    %c0_42 = arith.constant 0 : index
    %116 = vector.load %arg2[%115, %c0_42] : memref<1000x128xf32, #tpu.memory_space<vmem>>, vector<1x128xf32>
    %117 = arith.addf %110, %116 : vector<1x128xf32>
    %c8_i32_43 = arith.constant 8 : i32
    %cst_44 = arith.constant 1.250000e-01 : f32
    %118 = vector.broadcast %cst_44 : f32 to vector<1x128xf32>
    %119 = arith.mulf %117, %118 : vector<1x128xf32>
    %c1 = arith.constant 1 : index
    %c0_45 = arith.constant 0 : index
    %120 = vector.load %arg3[%c1, %c0_45] : memref<8x128xf32, #tpu.memory_space<vmem>>, vector<1x128xf32>
    tpu.vector_store %arg3[%c1, %c0_45], %119 {strides = array<i32>} : memref<8x128xf32, #tpu.memory_space<vmem>>, vector<1x128xf32>,
    %cst_46 = arith.constant 0.000000e+00 : f32
    %121 = vector.broadcast %cst_46 : f32 to vector<1x128xf32>
    %c0_i32_47 = arith.constant 0 : i32
    %c16_i32 = arith.constant 16 : i32
    %122 = arith.addi %0, %c16_i32 : i32
    %123 = arith.addi %122, %c0_i32_47 : i32
    %124 = arith.index_cast %123 : i32 to index
    %125 = memref.load %arg1[%124] : memref<128xi32, #tpu.memory_space<smem>>
    %126 = arith.index_cast %125 : i32 to index
    %c0_48 = arith.constant 0 : index
    %127 = vector.load %arg2[%126, %c0_48] : memref<1000x128xf32, #tpu.memory_space<vmem>>, vector<1x128xf32>
    %128 = arith.addf %121, %127 : vector<1x128xf32>
    %c1_i32_49 = arith.constant 1 : i32
    %c16_i32_50 = arith.constant 16 : i32
    %129 = arith.addi %0, %c16_i32_50 : i32
    %130 = arith.addi %129, %c1_i32_49 : i32
    %131 = arith.index_cast %130 : i32 to index
    %132 = memref.load %arg1[%131] : memref<128xi32, #tpu.memory_space<smem>>
    %133 = arith.index_cast %132 : i32 to index
    %c0_51 = arith.constant 0 : index
    %134 = vector.load %arg2[%133, %c0_51] : memref<1000x128xf32, #tpu.memory_space<vmem>>, vector<1x128xf32>
    %135 = arith.addf %128, %134 : vector<1x128xf32>
    %c2_i32_52 = arith.constant 2 : i32
    %c16_i32_53 = arith.constant 16 : i32
    %136 = arith.addi %0, %c16_i32_53 : i32
    %137 = arith.addi %136, %c2_i32_52 : i32
    %138 = arith.index_cast %137 : i32 to index
    %139 = memref.load %arg1[%138] : memref<128xi32, #tpu.memory_space<smem>>
    %140 = arith.index_cast %139 : i32 to index
    %c0_54 = arith.constant 0 : index
    %141 = vector.load %arg2[%140, %c0_54] : memref<1000x128xf32, #tpu.memory_space<vmem>>, vector<1x128xf32>
    %142 = arith.addf %135, %141 : vector<1x128xf32>
    %c3_i32_55 = arith.constant 3 : i32
    %c16_i32_56 = arith.constant 16 : i32
    %143 = arith.addi %0, %c16_i32_56 : i32
    %144 = arith.addi %143, %c3_i32_55 : i32
    %145 = arith.index_cast %144 : i32 to index
    %146 = memref.load %arg1[%145] : memref<128xi32, #tpu.memory_space<smem>>
    %147 = arith.index_cast %146 : i32 to index
    %c0_57 = arith.constant 0 : index
    %148 = vector.load %arg2[%147, %c0_57] : memref<1000x128xf32, #tpu.memory_space<vmem>>, vector<1x128xf32>
    %149 = arith.addf %142, %148 : vector<1x128xf32>
    %c4_i32_58 = arith.constant 4 : i32
    %c16_i32_59 = arith.constant 16 : i32
    %150 = arith.addi %0, %c16_i32_59 : i32
    %151 = arith.addi %150, %c4_i32_58 : i32
    %152 = arith.index_cast %151 : i32 to index
    %153 = memref.load %arg1[%152] : memref<128xi32, #tpu.memory_space<smem>>
    %154 = arith.index_cast %153 : i32 to index
    %c0_60 = arith.constant 0 : index
    %155 = vector.load %arg2[%154, %c0_60] : memref<1000x128xf32, #tpu.memory_space<vmem>>, vector<1x128xf32>
    %156 = arith.addf %149, %155 : vector<1x128xf32>
    %c5_i32_61 = arith.constant 5 : i32
    %c16_i32_62 = arith.constant 16 : i32
    %157 = arith.addi %0, %c16_i32_62 : i32
    %158 = arith.addi %157, %c5_i32_61 : i32
    %159 = arith.index_cast %158 : i32 to index
    %160 = memref.load %arg1[%159] : memref<128xi32, #tpu.memory_space<smem>>
    %161 = arith.index_cast %160 : i32 to index
    %c0_63 = arith.constant 0 : index
    %162 = vector.load %arg2[%161, %c0_63] : memref<1000x128xf32, #tpu.memory_space<vmem>>, vector<1x128xf32>
    %163 = arith.addf %156, %162 : vector<1x128xf32>
    %c6_i32_64 = arith.constant 6 : i32
    %c16_i32_65 = arith.constant 16 : i32
    %164 = arith.addi %0, %c16_i32_65 : i32
    %165 = arith.addi %164, %c6_i32_64 : i32
    %166 = arith.index_cast %165 : i32 to index
    %167 = memref.load %arg1[%166] : memref<128xi32, #tpu.memory_space<smem>>
    %168 = arith.index_cast %167 : i32 to index
    %c0_66 = arith.constant 0 : index
    %169 = vector.load %arg2[%168, %c0_66] : memref<1000x128xf32, #tpu.memory_space<vmem>>, vector<1x128xf32>
    %170 = arith.addf %163, %169 : vector<1x128xf32>
    %c7_i32_67 = arith.constant 7 : i32
    %c16_i32_68 = arith.constant 16 : i32
    %171 = arith.addi %0, %c16_i32_68 : i32
    %172 = arith.addi %171, %c7_i32_67 : i32
    %173 = arith.index_cast %172 : i32 to index
    %174 = memref.load %arg1[%173] : memref<128xi32, #tpu.memory_space<smem>>
    %175 = arith.index_cast %174 : i32 to index
    %c0_69 = arith.constant 0 : index
    %176 = vector.load %arg2[%175, %c0_69] : memref<1000x128xf32, #tpu.memory_space<vmem>>, vector<1x128xf32>
    %177 = arith.addf %170, %176 : vector<1x128xf32>
    %c8_i32_70 = arith.constant 8 : i32
    %cst_71 = arith.constant 1.250000e-01 : f32
    %178 = vector.broadcast %cst_71 : f32 to vector<1x128xf32>
    %179 = arith.mulf %177, %178 : vector<1x128xf32>
    %c2 = arith.constant 2 : index
    %c0_72 = arith.constant 0 : index
    %180 = vector.load %arg3[%c2, %c0_72] : memref<8x128xf32, #tpu.memory_space<vmem>>, vector<1x128xf32>
    tpu.vector_store %arg3[%c2, %c0_72], %179 {strides = array<i32>} : memref<8x128xf32, #tpu.memory_space<vmem>>, vector<1x128xf32>,
    %cst_73 = arith.constant 0.000000e+00 : f32
    %181 = vector.broadcast %cst_73 : f32 to vector<1x128xf32>
    %c0_i32_74 = arith.constant 0 : i32
    %c24_i32 = arith.constant 24 : i32
    %182 = arith.addi %0, %c24_i32 : i32
    %183 = arith.addi %182, %c0_i32_74 : i32
    %184 = arith.index_cast %183 : i32 to index
    %185 = memref.load %arg1[%184] : memref<128xi32, #tpu.memory_space<smem>>
    %186 = arith.index_cast %185 : i32 to index
    %c0_75 = arith.constant 0 : index
    %187 = vector.load %arg2[%186, %c0_75] : memref<1000x128xf32, #tpu.memory_space<vmem>>, vector<1x128xf32>
    %188 = arith.addf %181, %187 : vector<1x128xf32>
    %c1_i32_76 = arith.constant 1 : i32
    %c24_i32_77 = arith.constant 24 : i32
    %189 = arith.addi %0, %c24_i32_77 : i32
    %190 = arith.addi %189, %c1_i32_76 : i32
    %191 = arith.index_cast %190 : i32 to index
    %192 = memref.load %arg1[%191] : memref<128xi32, #tpu.memory_space<smem>>
    %193 = arith.index_cast %192 : i32 to index
    %c0_78 = arith.constant 0 : index
    %194 = vector.load %arg2[%193, %c0_78] : memref<1000x128xf32, #tpu.memory_space<vmem>>, vector<1x128xf32>
    %195 = arith.addf %188, %194 : vector<1x128xf32>
    %c2_i32_79 = arith.constant 2 : i32
    %c24_i32_80 = arith.constant 24 : i32
    %196 = arith.addi %0, %c24_i32_80 : i32
    %197 = arith.addi %196, %c2_i32_79 : i32
    %198 = arith.index_cast %197 : i32 to index
    %199 = memref.load %arg1[%198] : memref<128xi32, #tpu.memory_space<smem>>
    %200 = arith.index_cast %199 : i32 to index
    %c0_81 = arith.constant 0 : index
    %201 = vector.load %arg2[%200, %c0_81] : memref<1000x128xf32, #tpu.memory_space<vmem>>, vector<1x128xf32>
    %202 = arith.addf %195, %201 : vector<1x128xf32>
    %c3_i32_82 = arith.constant 3 : i32
    %c24_i32_83 = arith.constant 24 : i32
    %203 = arith.addi %0, %c24_i32_83 : i32
    %204 = arith.addi %203, %c3_i32_82 : i32
    %205 = arith.index_cast %204 : i32 to index
    %206 = memref.load %arg1[%205] : memref<128xi32, #tpu.memory_space<smem>>
    %207 = arith.index_cast %206 : i32 to index
    %c0_84 = arith.constant 0 : index
    %208 = vector.load %arg2[%207, %c0_84] : memref<1000x128xf32, #tpu.memory_space<vmem>>, vector<1x128xf32>
    %209 = arith.addf %202, %208 : vector<1x128xf32>
    %c4_i32_85 = arith.constant 4 : i32
    %c24_i32_86 = arith.constant 24 : i32
    %210 = arith.addi %0, %c24_i32_86 : i32
    %211 = arith.addi %210, %c4_i32_85 : i32
    %212 = arith.index_cast %211 : i32 to index
    %213 = memref.load %arg1[%212] : memref<128xi32, #tpu.memory_space<smem>>
    %214 = arith.index_cast %213 : i32 to index
    %c0_87 = arith.constant 0 : index
    %215 = vector.load %arg2[%214, %c0_87] : memref<1000x128xf32, #tpu.memory_space<vmem>>, vector<1x128xf32>
    %216 = arith.addf %209, %215 : vector<1x128xf32>
    %c5_i32_88 = arith.constant 5 : i32
    %c24_i32_89 = arith.constant 24 : i32
    %217 = arith.addi %0, %c24_i32_89 : i32
    %218 = arith.addi %217, %c5_i32_88 : i32
    %219 = arith.index_cast %218 : i32 to index
    %220 = memref.load %arg1[%219] : memref<128xi32, #tpu.memory_space<smem>>
    %221 = arith.index_cast %220 : i32 to index
    %c0_90 = arith.constant 0 : index
    %222 = vector.load %arg2[%221, %c0_90] : memref<1000x128xf32, #tpu.memory_space<vmem>>, vector<1x128xf32>
    %223 = arith.addf %216, %222 : vector<1x128xf32>
    %c6_i32_91 = arith.constant 6 : i32
    %c24_i32_92 = arith.constant 24 : i32
    %224 = arith.addi %0, %c24_i32_92 : i32
    %225 = arith.addi %224, %c6_i32_91 : i32
    %226 = arith.index_cast %225 : i32 to index
    %227 = memref.load %arg1[%226] : memref<128xi32, #tpu.memory_space<smem>>
    %228 = arith.index_cast %227 : i32 to index
    %c0_93 = arith.constant 0 : index
    %229 = vector.load %arg2[%228, %c0_93] : memref<1000x128xf32, #tpu.memory_space<vmem>>, vector<1x128xf32>
    %230 = arith.addf %223, %229 : vector<1x128xf32>
    %c7_i32_94 = arith.constant 7 : i32
    %c24_i32_95 = arith.constant 24 : i32
    %231 = arith.addi %0, %c24_i32_95 : i32
    %232 = arith.addi %231, %c7_i32_94 : i32
    %233 = arith.index_cast %232 : i32 to index
    %234 = memref.load %arg1[%233] : memref<128xi32, #tpu.memory_space<smem>>
    %235 = arith.index_cast %234 : i32 to index
    %c0_96 = arith.constant 0 : index
    %236 = vector.load %arg2[%235, %c0_96] : memref<1000x128xf32, #tpu.memory_space<vmem>>, vector<1x128xf32>
    %237 = arith.addf %230, %236 : vector<1x128xf32>
    %c8_i32_97 = arith.constant 8 : i32
    %cst_98 = arith.constant 1.250000e-01 : f32
    %238 = vector.broadcast %cst_98 : f32 to vector<1x128xf32>
    %239 = arith.mulf %237, %238 : vector<1x128xf32>
    %c3 = arith.constant 3 : index
    %c0_99 = arith.constant 0 : index
    %240 = vector.load %arg3[%c3, %c0_99] : memref<8x128xf32, #tpu.memory_space<vmem>>, vector<1x128xf32>
    tpu.vector_store %arg3[%c3, %c0_99], %239 {strides = array<i32>} : memref<8x128xf32, #tpu.memory_space<vmem>>, vector<1x128xf32>,
    %cst_100 = arith.constant 0.000000e+00 : f32
    %241 = vector.broadcast %cst_100 : f32 to vector<1x128xf32>
    %c0_i32_101 = arith.constant 0 : i32
    %c32_i32 = arith.constant 32 : i32
    %242 = arith.addi %0, %c32_i32 : i32
    %243 = arith.addi %242, %c0_i32_101 : i32
    %244 = arith.index_cast %243 : i32 to index
    %245 = memref.load %arg1[%244] : memref<128xi32, #tpu.memory_space<smem>>
    %246 = arith.index_cast %245 : i32 to index
    %c0_102 = arith.constant 0 : index
    %247 = vector.load %arg2[%246, %c0_102] : memref<1000x128xf32, #tpu.memory_space<vmem>>, vector<1x128xf32>
    %248 = arith.addf %241, %247 : vector<1x128xf32>
    %c1_i32_103 = arith.constant 1 : i32
    %c32_i32_104 = arith.constant 32 : i32
    %249 = arith.addi %0, %c32_i32_104 : i32
    %250 = arith.addi %249, %c1_i32_103 : i32
    %251 = arith.index_cast %250 : i32 to index
    %252 = memref.load %arg1[%251] : memref<128xi32, #tpu.memory_space<smem>>
    %253 = arith.index_cast %252 : i32 to index
    %c0_105 = arith.constant 0 : index
    %254 = vector.load %arg2[%253, %c0_105] : memref<1000x128xf32, #tpu.memory_space<vmem>>, vector<1x128xf32>
    %255 = arith.addf %248, %254 : vector<1x128xf32>
    %c2_i32_106 = arith.constant 2 : i32
    %c32_i32_107 = arith.constant 32 : i32
    %256 = arith.addi %0, %c32_i32_107 : i32
    %257 = arith.addi %256, %c2_i32_106 : i32
    %258 = arith.index_cast %257 : i32 to index
    %259 = memref.load %arg1[%258] : memref<128xi32, #tpu.memory_space<smem>>
    %260 = arith.index_cast %259 : i32 to index
    %c0_108 = arith.constant 0 : index
    %261 = vector.load %arg2[%260, %c0_108] : memref<1000x128xf32, #tpu.memory_space<vmem>>, vector<1x128xf32>
    %262 = arith.addf %255, %261 : vector<1x128xf32>
    %c3_i32_109 = arith.constant 3 : i32
    %c32_i32_110 = arith.constant 32 : i32
    %263 = arith.addi %0, %c32_i32_110 : i32
    %264 = arith.addi %263, %c3_i32_109 : i32
    %265 = arith.index_cast %264 : i32 to index
    %266 = memref.load %arg1[%265] : memref<128xi32, #tpu.memory_space<smem>>
    %267 = arith.index_cast %266 : i32 to index
    %c0_111 = arith.constant 0 : index
    %268 = vector.load %arg2[%267, %c0_111] : memref<1000x128xf32, #tpu.memory_space<vmem>>, vector<1x128xf32>
    %269 = arith.addf %262, %268 : vector<1x128xf32>
    %c4_i32_112 = arith.constant 4 : i32
    %c32_i32_113 = arith.constant 32 : i32
    %270 = arith.addi %0, %c32_i32_113 : i32
    %271 = arith.addi %270, %c4_i32_112 : i32
    %272 = arith.index_cast %271 : i32 to index
    %273 = memref.load %arg1[%272] : memref<128xi32, #tpu.memory_space<smem>>
    %274 = arith.index_cast %273 : i32 to index
    %c0_114 = arith.constant 0 : index
    %275 = vector.load %arg2[%274, %c0_114] : memref<1000x128xf32, #tpu.memory_space<vmem>>, vector<1x128xf32>
    %276 = arith.addf %269, %275 : vector<1x128xf32>
    %c5_i32_115 = arith.constant 5 : i32
    %c32_i32_116 = arith.constant 32 : i32
    %277 = arith.addi %0, %c32_i32_116 : i32
    %278 = arith.addi %277, %c5_i32_115 : i32
    %279 = arith.index_cast %278 : i32 to index
    %280 = memref.load %arg1[%279] : memref<128xi32, #tpu.memory_space<smem>>
    %281 = arith.index_cast %280 : i32 to index
    %c0_117 = arith.constant 0 : index
    %282 = vector.load %arg2[%281, %c0_117] : memref<1000x128xf32, #tpu.memory_space<vmem>>, vector<1x128xf32>
    %283 = arith.addf %276, %282 : vector<1x128xf32>
    %c6_i32_118 = arith.constant 6 : i32
    %c32_i32_119 = arith.constant 32 : i32
    %284 = arith.addi %0, %c32_i32_119 : i32
    %285 = arith.addi %284, %c6_i32_118 : i32
    %286 = arith.index_cast %285 : i32 to index
    %287 = memref.load %arg1[%286] : memref<128xi32, #tpu.memory_space<smem>>
    %288 = arith.index_cast %287 : i32 to index
    %c0_120 = arith.constant 0 : index
    %289 = vector.load %arg2[%288, %c0_120] : memref<1000x128xf32, #tpu.memory_space<vmem>>, vector<1x128xf32>
    %290 = arith.addf %283, %289 : vector<1x128xf32>
    %c7_i32_121 = arith.constant 7 : i32
    %c32_i32_122 = arith.constant 32 : i32
    %291 = arith.addi %0, %c32_i32_122 : i32
    %292 = arith.addi %291, %c7_i32_121 : i32
    %293 = arith.index_cast %292 : i32 to index
    %294 = memref.load %arg1[%293] : memref<128xi32, #tpu.memory_space<smem>>
    %295 = arith.index_cast %294 : i32 to index
    %c0_123 = arith.constant 0 : index
    %296 = vector.load %arg2[%295, %c0_123] : memref<1000x128xf32, #tpu.memory_space<vmem>>, vector<1x128xf32>
    %297 = arith.addf %290, %296 : vector<1x128xf32>
    %c8_i32_124 = arith.constant 8 : i32
    %cst_125 = arith.constant 1.250000e-01 : f32
    %298 = vector.broadcast %cst_125 : f32 to vector<1x128xf32>
    %299 = arith.mulf %297, %298 : vector<1x128xf32>
    %c4 = arith.constant 4 : index
    %c0_126 = arith.constant 0 : index
    %300 = vector.load %arg3[%c4, %c0_126] : memref<8x128xf32, #tpu.memory_space<vmem>>, vector<1x128xf32>
    tpu.vector_store %arg3[%c4, %c0_126], %299 {strides = array<i32>} : memref<8x128xf32, #tpu.memory_space<vmem>>, vector<1x128xf32>,
    %cst_127 = arith.constant 0.000000e+00 : f32
    %301 = vector.broadcast %cst_127 : f32 to vector<1x128xf32>
    %c0_i32_128 = arith.constant 0 : i32
    %c40_i32 = arith.constant 40 : i32
    %302 = arith.addi %0, %c40_i32 : i32
    %303 = arith.addi %302, %c0_i32_128 : i32
    %304 = arith.index_cast %303 : i32 to index
    %305 = memref.load %arg1[%304] : memref<128xi32, #tpu.memory_space<smem>>
    %306 = arith.index_cast %305 : i32 to index
    %c0_129 = arith.constant 0 : index
    %307 = vector.load %arg2[%306, %c0_129] : memref<1000x128xf32, #tpu.memory_space<vmem>>, vector<1x128xf32>
    %308 = arith.addf %301, %307 : vector<1x128xf32>
    %c1_i32_130 = arith.constant 1 : i32
    %c40_i32_131 = arith.constant 40 : i32
    %309 = arith.addi %0, %c40_i32_131 : i32
    %310 = arith.addi %309, %c1_i32_130 : i32
    %311 = arith.index_cast %310 : i32 to index
    %312 = memref.load %arg1[%311] : memref<128xi32, #tpu.memory_space<smem>>
    %313 = arith.index_cast %312 : i32 to index
    %c0_132 = arith.constant 0 : index
    %314 = vector.load %arg2[%313, %c0_132] : memref<1000x128xf32, #tpu.memory_space<vmem>>, vector<1x128xf32>
    %315 = arith.addf %308, %314 : vector<1x128xf32>
    %c2_i32_133 = arith.constant 2 : i32
    %c40_i32_134 = arith.constant 40 : i32
    %316 = arith.addi %0, %c40_i32_134 : i32
    %317 = arith.addi %316, %c2_i32_133 : i32
    %318 = arith.index_cast %317 : i32 to index
    %319 = memref.load %arg1[%318] : memref<128xi32, #tpu.memory_space<smem>>
    %320 = arith.index_cast %319 : i32 to index
    %c0_135 = arith.constant 0 : index
    %321 = vector.load %arg2[%320, %c0_135] : memref<1000x128xf32, #tpu.memory_space<vmem>>, vector<1x128xf32>
    %322 = arith.addf %315, %321 : vector<1x128xf32>
    %c3_i32_136 = arith.constant 3 : i32
    %c40_i32_137 = arith.constant 40 : i32
    %323 = arith.addi %0, %c40_i32_137 : i32
    %324 = arith.addi %323, %c3_i32_136 : i32
    %325 = arith.index_cast %324 : i32 to index
    %326 = memref.load %arg1[%325] : memref<128xi32, #tpu.memory_space<smem>>
    %327 = arith.index_cast %326 : i32 to index
    %c0_138 = arith.constant 0 : index
    %328 = vector.load %arg2[%327, %c0_138] : memref<1000x128xf32, #tpu.memory_space<vmem>>, vector<1x128xf32>
    %329 = arith.addf %322, %328 : vector<1x128xf32>
    %c4_i32_139 = arith.constant 4 : i32
    %c40_i32_140 = arith.constant 40 : i32
    %330 = arith.addi %0, %c40_i32_140 : i32
    %331 = arith.addi %330, %c4_i32_139 : i32
    %332 = arith.index_cast %331 : i32 to index
    %333 = memref.load %arg1[%332] : memref<128xi32, #tpu.memory_space<smem>>
    %334 = arith.index_cast %333 : i32 to index
    %c0_141 = arith.constant 0 : index
    %335 = vector.load %arg2[%334, %c0_141] : memref<1000x128xf32, #tpu.memory_space<vmem>>, vector<1x128xf32>
    %336 = arith.addf %329, %335 : vector<1x128xf32>
    %c5_i32_142 = arith.constant 5 : i32
    %c40_i32_143 = arith.constant 40 : i32
    %337 = arith.addi %0, %c40_i32_143 : i32
    %338 = arith.addi %337, %c5_i32_142 : i32
    %339 = arith.index_cast %338 : i32 to index
    %340 = memref.load %arg1[%339] : memref<128xi32, #tpu.memory_space<smem>>
    %341 = arith.index_cast %340 : i32 to index
    %c0_144 = arith.constant 0 : index
    %342 = vector.load %arg2[%341, %c0_144] : memref<1000x128xf32, #tpu.memory_space<vmem>>, vector<1x128xf32>
    %343 = arith.addf %336, %342 : vector<1x128xf32>
    %c6_i32_145 = arith.constant 6 : i32
    %c40_i32_146 = arith.constant 40 : i32
    %344 = arith.addi %0, %c40_i32_146 : i32
    %345 = arith.addi %344, %c6_i32_145 : i32
    %346 = arith.index_cast %345 : i32 to index
    %347 = memref.load %arg1[%346] : memref<128xi32, #tpu.memory_space<smem>>
    %348 = arith.index_cast %347 : i32 to index
    %c0_147 = arith.constant 0 : index
    %349 = vector.load %arg2[%348, %c0_147] : memref<1000x128xf32, #tpu.memory_space<vmem>>, vector<1x128xf32>
    %350 = arith.addf %343, %349 : vector<1x128xf32>
    %c7_i32_148 = arith.constant 7 : i32
    %c40_i32_149 = arith.constant 40 : i32
    %351 = arith.addi %0, %c40_i32_149 : i32
    %352 = arith.addi %351, %c7_i32_148 : i32
    %353 = arith.index_cast %352 : i32 to index
    %354 = memref.load %arg1[%353] : memref<128xi32, #tpu.memory_space<smem>>
    %355 = arith.index_cast %354 : i32 to index
    %c0_150 = arith.constant 0 : index
    %356 = vector.load %arg2[%355, %c0_150] : memref<1000x128xf32, #tpu.memory_space<vmem>>, vector<1x128xf32>
    %357 = arith.addf %350, %356 : vector<1x128xf32>
    %c8_i32_151 = arith.constant 8 : i32
    %cst_152 = arith.constant 1.250000e-01 : f32
    %358 = vector.broadcast %cst_152 : f32 to vector<1x128xf32>
    %359 = arith.mulf %357, %358 : vector<1x128xf32>
    %c5 = arith.constant 5 : index
    %c0_153 = arith.constant 0 : index
    %360 = vector.load %arg3[%c5, %c0_153] : memref<8x128xf32, #tpu.memory_space<vmem>>, vector<1x128xf32>
    tpu.vector_store %arg3[%c5, %c0_153], %359 {strides = array<i32>} : memref<8x128xf32, #tpu.memory_space<vmem>>, vector<1x128xf32>,
    %cst_154 = arith.constant 0.000000e+00 : f32
    %361 = vector.broadcast %cst_154 : f32 to vector<1x128xf32>
    %c0_i32_155 = arith.constant 0 : i32
    %c48_i32 = arith.constant 48 : i32
    %362 = arith.addi %0, %c48_i32 : i32
    %363 = arith.addi %362, %c0_i32_155 : i32
    %364 = arith.index_cast %363 : i32 to index
    %365 = memref.load %arg1[%364] : memref<128xi32, #tpu.memory_space<smem>>
    %366 = arith.index_cast %365 : i32 to index
    %c0_156 = arith.constant 0 : index
    %367 = vector.load %arg2[%366, %c0_156] : memref<1000x128xf32, #tpu.memory_space<vmem>>, vector<1x128xf32>
    %368 = arith.addf %361, %367 : vector<1x128xf32>
    %c1_i32_157 = arith.constant 1 : i32
    %c48_i32_158 = arith.constant 48 : i32
    %369 = arith.addi %0, %c48_i32_158 : i32
    %370 = arith.addi %369, %c1_i32_157 : i32
    %371 = arith.index_cast %370 : i32 to index
    %372 = memref.load %arg1[%371] : memref<128xi32, #tpu.memory_space<smem>>
    %373 = arith.index_cast %372 : i32 to index
    %c0_159 = arith.constant 0 : index
    %374 = vector.load %arg2[%373, %c0_159] : memref<1000x128xf32, #tpu.memory_space<vmem>>, vector<1x128xf32>
    %375 = arith.addf %368, %374 : vector<1x128xf32>
    %c2_i32_160 = arith.constant 2 : i32
    %c48_i32_161 = arith.constant 48 : i32
    %376 = arith.addi %0, %c48_i32_161 : i32
    %377 = arith.addi %376, %c2_i32_160 : i32
    %378 = arith.index_cast %377 : i32 to index
    %379 = memref.load %arg1[%378] : memref<128xi32, #tpu.memory_space<smem>>
    %380 = arith.index_cast %379 : i32 to index
    %c0_162 = arith.constant 0 : index
    %381 = vector.load %arg2[%380, %c0_162] : memref<1000x128xf32, #tpu.memory_space<vmem>>, vector<1x128xf32>
    %382 = arith.addf %375, %381 : vector<1x128xf32>
    %c3_i32_163 = arith.constant 3 : i32
    %c48_i32_164 = arith.constant 48 : i32
    %383 = arith.addi %0, %c48_i32_164 : i32
    %384 = arith.addi %383, %c3_i32_163 : i32
    %385 = arith.index_cast %384 : i32 to index
    %386 = memref.load %arg1[%385] : memref<128xi32, #tpu.memory_space<smem>>
    %387 = arith.index_cast %386 : i32 to index
    %c0_165 = arith.constant 0 : index
    %388 = vector.load %arg2[%387, %c0_165] : memref<1000x128xf32, #tpu.memory_space<vmem>>, vector<1x128xf32>
    %389 = arith.addf %382, %388 : vector<1x128xf32>
    %c4_i32_166 = arith.constant 4 : i32
    %c48_i32_167 = arith.constant 48 : i32
    %390 = arith.addi %0, %c48_i32_167 : i32
    %391 = arith.addi %390, %c4_i32_166 : i32
    %392 = arith.index_cast %391 : i32 to index
    %393 = memref.load %arg1[%392] : memref<128xi32, #tpu.memory_space<smem>>
    %394 = arith.index_cast %393 : i32 to index
    %c0_168 = arith.constant 0 : index
    %395 = vector.load %arg2[%394, %c0_168] : memref<1000x128xf32, #tpu.memory_space<vmem>>, vector<1x128xf32>
    %396 = arith.addf %389, %395 : vector<1x128xf32>
    %c5_i32_169 = arith.constant 5 : i32
    %c48_i32_170 = arith.constant 48 : i32
    %397 = arith.addi %0, %c48_i32_170 : i32
    %398 = arith.addi %397, %c5_i32_169 : i32
    %399 = arith.index_cast %398 : i32 to index
    %400 = memref.load %arg1[%399] : memref<128xi32, #tpu.memory_space<smem>>
    %401 = arith.index_cast %400 : i32 to index
    %c0_171 = arith.constant 0 : index
    %402 = vector.load %arg2[%401, %c0_171] : memref<1000x128xf32, #tpu.memory_space<vmem>>, vector<1x128xf32>
    %403 = arith.addf %396, %402 : vector<1x128xf32>
    %c6_i32_172 = arith.constant 6 : i32
    %c48_i32_173 = arith.constant 48 : i32
    %404 = arith.addi %0, %c48_i32_173 : i32
    %405 = arith.addi %404, %c6_i32_172 : i32
    %406 = arith.index_cast %405 : i32 to index
    %407 = memref.load %arg1[%406] : memref<128xi32, #tpu.memory_space<smem>>
    %408 = arith.index_cast %407 : i32 to index
    %c0_174 = arith.constant 0 : index
    %409 = vector.load %arg2[%408, %c0_174] : memref<1000x128xf32, #tpu.memory_space<vmem>>, vector<1x128xf32>
    %410 = arith.addf %403, %409 : vector<1x128xf32>
    %c7_i32_175 = arith.constant 7 : i32
    %c48_i32_176 = arith.constant 48 : i32
    %411 = arith.addi %0, %c48_i32_176 : i32
    %412 = arith.addi %411, %c7_i32_175 : i32
    %413 = arith.index_cast %412 : i32 to index
    %414 = memref.load %arg1[%413] : memref<128xi32, #tpu.memory_space<smem>>
    %415 = arith.index_cast %414 : i32 to index
    %c0_177 = arith.constant 0 : index
    %416 = vector.load %arg2[%415, %c0_177] : memref<1000x128xf32, #tpu.memory_space<vmem>>, vector<1x128xf32>
    %417 = arith.addf %410, %416 : vector<1x128xf32>
    %c8_i32_178 = arith.constant 8 : i32
    %cst_179 = arith.constant 1.250000e-01 : f32
    %418 = vector.broadcast %cst_179 : f32 to vector<1x128xf32>
    %419 = arith.mulf %417, %418 : vector<1x128xf32>
    %c6 = arith.constant 6 : index
    %c0_180 = arith.constant 0 : index
    %420 = vector.load %arg3[%c6, %c0_180] : memref<8x128xf32, #tpu.memory_space<vmem>>, vector<1x128xf32>
    tpu.vector_store %arg3[%c6, %c0_180], %419 {strides = array<i32>} : memref<8x128xf32, #tpu.memory_space<vmem>>, vector<1x128xf32>,
    %cst_181 = arith.constant 0.000000e+00 : f32
    %421 = vector.broadcast %cst_181 : f32 to vector<1x128xf32>
    %c0_i32_182 = arith.constant 0 : i32
    %c56_i32 = arith.constant 56 : i32
    %422 = arith.addi %0, %c56_i32 : i32
    %423 = arith.addi %422, %c0_i32_182 : i32
    %424 = arith.index_cast %423 : i32 to index
    %425 = memref.load %arg1[%424] : memref<128xi32, #tpu.memory_space<smem>>
    %426 = arith.index_cast %425 : i32 to index
    %c0_183 = arith.constant 0 : index
    %427 = vector.load %arg2[%426, %c0_183] : memref<1000x128xf32, #tpu.memory_space<vmem>>, vector<1x128xf32>
    %428 = arith.addf %421, %427 : vector<1x128xf32>
    %c1_i32_184 = arith.constant 1 : i32
    %c56_i32_185 = arith.constant 56 : i32
    %429 = arith.addi %0, %c56_i32_185 : i32
    %430 = arith.addi %429, %c1_i32_184 : i32
    %431 = arith.index_cast %430 : i32 to index
    %432 = memref.load %arg1[%431] : memref<128xi32, #tpu.memory_space<smem>>
    %433 = arith.index_cast %432 : i32 to index
    %c0_186 = arith.constant 0 : index
    %434 = vector.load %arg2[%433, %c0_186] : memref<1000x128xf32, #tpu.memory_space<vmem>>, vector<1x128xf32>
    %435 = arith.addf %428, %434 : vector<1x128xf32>
    %c2_i32_187 = arith.constant 2 : i32
    %c56_i32_188 = arith.constant 56 : i32
    %436 = arith.addi %0, %c56_i32_188 : i32
    %437 = arith.addi %436, %c2_i32_187 : i32
    %438 = arith.index_cast %437 : i32 to index
    %439 = memref.load %arg1[%438] : memref<128xi32, #tpu.memory_space<smem>>
    %440 = arith.index_cast %439 : i32 to index
    %c0_189 = arith.constant 0 : index
    %441 = vector.load %arg2[%440, %c0_189] : memref<1000x128xf32, #tpu.memory_space<vmem>>, vector<1x128xf32>
    %442 = arith.addf %435, %441 : vector<1x128xf32>
    %c3_i32_190 = arith.constant 3 : i32
    %c56_i32_191 = arith.constant 56 : i32
    %443 = arith.addi %0, %c56_i32_191 : i32
    %444 = arith.addi %443, %c3_i32_190 : i32
    %445 = arith.index_cast %444 : i32 to index
    %446 = memref.load %arg1[%445] : memref<128xi32, #tpu.memory_space<smem>>
    %447 = arith.index_cast %446 : i32 to index
    %c0_192 = arith.constant 0 : index
    %448 = vector.load %arg2[%447, %c0_192] : memref<1000x128xf32, #tpu.memory_space<vmem>>, vector<1x128xf32>
    %449 = arith.addf %442, %448 : vector<1x128xf32>
    %c4_i32_193 = arith.constant 4 : i32
    %c56_i32_194 = arith.constant 56 : i32
    %450 = arith.addi %0, %c56_i32_194 : i32
    %451 = arith.addi %450, %c4_i32_193 : i32
    %452 = arith.index_cast %451 : i32 to index
    %453 = memref.load %arg1[%452] : memref<128xi32, #tpu.memory_space<smem>>
    %454 = arith.index_cast %453 : i32 to index
    %c0_195 = arith.constant 0 : index
    %455 = vector.load %arg2[%454, %c0_195] : memref<1000x128xf32, #tpu.memory_space<vmem>>, vector<1x128xf32>
    %456 = arith.addf %449, %455 : vector<1x128xf32>
    %c5_i32_196 = arith.constant 5 : i32
    %c56_i32_197 = arith.constant 56 : i32
    %457 = arith.addi %0, %c56_i32_197 : i32
    %458 = arith.addi %457, %c5_i32_196 : i32
    %459 = arith.index_cast %458 : i32 to index
    %460 = memref.load %arg1[%459] : memref<128xi32, #tpu.memory_space<smem>>
    %461 = arith.index_cast %460 : i32 to index
    %c0_198 = arith.constant 0 : index
    %462 = vector.load %arg2[%461, %c0_198] : memref<1000x128xf32, #tpu.memory_space<vmem>>, vector<1x128xf32>
    %463 = arith.addf %456, %462 : vector<1x128xf32>
    %c6_i32_199 = arith.constant 6 : i32
    %c56_i32_200 = arith.constant 56 : i32
    %464 = arith.addi %0, %c56_i32_200 : i32
    %465 = arith.addi %464, %c6_i32_199 : i32
    %466 = arith.index_cast %465 : i32 to index
    %467 = memref.load %arg1[%466] : memref<128xi32, #tpu.memory_space<smem>>
    %468 = arith.index_cast %467 : i32 to index
    %c0_201 = arith.constant 0 : index
    %469 = vector.load %arg2[%468, %c0_201] : memref<1000x128xf32, #tpu.memory_space<vmem>>, vector<1x128xf32>
    %470 = arith.addf %463, %469 : vector<1x128xf32>
    %c7_i32_202 = arith.constant 7 : i32
    %c56_i32_203 = arith.constant 56 : i32
    %471 = arith.addi %0, %c56_i32_203 : i32
    %472 = arith.addi %471, %c7_i32_202 : i32
    %473 = arith.index_cast %472 : i32 to index
    %474 = memref.load %arg1[%473] : memref<128xi32, #tpu.memory_space<smem>>
    %475 = arith.index_cast %474 : i32 to index
    %c0_204 = arith.constant 0 : index
    %476 = vector.load %arg2[%475, %c0_204] : memref<1000x128xf32, #tpu.memory_space<vmem>>, vector<1x128xf32>
    %477 = arith.addf %470, %476 : vector<1x128xf32>
    %c8_i32_205 = arith.constant 8 : i32
    %cst_206 = arith.constant 1.250000e-01 : f32
    %478 = vector.broadcast %cst_206 : f32 to vector<1x128xf32>
    %479 = arith.mulf %477, %478 : vector<1x128xf32>
    %c7 = arith.constant 7 : index
    %c0_207 = arith.constant 0 : index
    %480 = vector.load %arg3[%c7, %c0_207] : memref<8x128xf32, #tpu.memory_space<vmem>>, vector<1x128xf32>
    tpu.vector_store %arg3[%c7, %c0_207], %479 {strides = array<i32>} : memref<8x128xf32, #tpu.memory_space<vmem>>, vector<1x128xf32>,
    return
  }
  func.func @transform_0(%arg0: i32, %arg1: memref<128xi32, #tpu.memory_space<smem>>) -> (i32, i32) {
    %c0_i32 = arith.constant 0 : i32
    %c0_i32_0 = arith.constant 0 : i32
    %c0_i32_1 = arith.constant 0 : i32
    return %c0_i32, %c0_i32_0 : i32, i32
  }
  func.func @transform_1(%arg0: i32, %arg1: memref<128xi32, #tpu.memory_space<smem>>) -> (i32, i32) {
    %c0_i32 = arith.constant 0 : i32
    %c0_i32_0 = arith.constant 0 : i32
    return %arg0, %c0_i32 : i32, i32
  }
}

</mosaic_0001>

<bundles_post_ra>
// kernel: tpu_custom_call.1
= control target key start
LH: loop header
LB: loop body
LE: loop exit
PB: predicated region body
PF: predicated region fallthrough
CT: control target
= control target key end

     0   :  { %s772_s12 = smov [#allocation3]   ;;  %s975_s0 = inlined_call_operand.hbm [shape: s32[128], index: 0, kind: input, shape index: {}]   ;;  %s976_s1 = inlined_call_operand.hbm [shape: f32[1000,128], index: 1, kind: input, shape index: {}]   ;;  %s977_s2 = inlined_call_operand.hbm [shape: f32[16,128], index: 2, kind: output, shape index: {}]  }
   0x1   :  { %s8_s11 = sshll.u32 %s975_s0, 4  ;;  %s9_s11 = int_to_ptr.hbm [resolvable:$true] %s8_s11 }
   0x2   :  { %11 = dma.hbm_to_smem %s9_s11, 16, %s772_s12, [#allocation2] }
   0x3   :  { %746 = dma.done.wait [#allocation2], 16 }
   0x4   :  { %747 = vsyncadd [#allocation2], 4294967280 }
   0x5   :  { %14 = sfence }
   0x6   :  { %15 = vsyncpa [#allocation5], 0 }
   0x7   :  { %16 = vsyncpa [#allocation6], 0 }
   0x8   :  { %18 = vsyncpa [#allocation6 + $0x1], 0  ;;  %s794_s13 = smov 0   ;;  %s796_s14 = smov 0  }
   0x9   :  { %s798_s15 = smov 0   ;;  %s800_s16 = smov 0  }
   0xa LB: > { %s815_s0 = sadd.s32 4294967295, %s770_s16   ;;  %s596_s17 = sadd.s32 4294967294, %s770_s16   ;;  %s770_s16 = sphi %s800_s16, %s985_s16   ;;  %s766_s15 = sphi %s798_s15, %s984_s15   ;;  %s762_s14 = sphi %s796_s14, %s983_s14   ;;  %s758_s13 = sphi %s794_s13, %s982_s13  }
   0xb   : > { %s819_s18 = sadd.s32 1, %s770_s16   ;;  %s52_s19 = sadd.s32 1, %s766_s15 }
   0xc   : > { %s49_s20 = ssub.s32 %s770_s16, %s819_s18  ;;  %p62_p0 = scmp.ne.s32.totalorder %s766_s15, %s762_s14 }
   0xd   : > { %p50_p1 = scmp.eq.s32.totalorder %s49_s20, 0  ;;  %p63_p2 = scmp.eq.s32.totalorder %s815_s0, 1 }
   0xe   : > { %p68_p3 = scmp.ne.s32.totalorder %s762_s14, %s758_s13  ;;  %p69_p4 = scmp.eq.s32.totalorder %s596_s17, 1 }
   0xf   : > { %s830_s21 = scalar_select %p50_p1, %s766_s15, %s52_s19  }
  0x10   : > { %p832_p5 = por %p63_p2, %p62_p0  ;;  %p836_p6 = por %p69_p4, %p68_p3 }
  0x11   : > { %p597_p7 = scmp.ge.s32.totalorder %s770_s16, 1  ;;  %p76_p8 = scmp.lt.s32.totalorder %s770_s16, 3 }
  0x12   : > { %p621_p9 = scmp.eq.s32.totalorder %s815_s0, 0  ;;  %s87_s26 = sshll.u32 %s976_s1, 4  ;;  %s88_s26 = int_to_ptr.hbm [resolvable:$true] %s87_s26 }
  0x13   : > { %p77_p10 = pnand %p597_p7, %p76_p8  ;;  %s773_s27 = smov [#allocation4]  }
  0x14   : > { %s89_s28 = sshll.u32 %s773_s27, 4  ;;  %s774_s29 = smov 128   ;;  %s90_s28 = int_to_ptr.vmem [resolvable:$true] %s89_s28 }
  0x15   : > { %p613_p11 = pneg %p77_p10  ;;  %s775_s30 = smov 8  }
  0x16   : > { %105 = sbr.rel (%p77_p10) target bundleno = 141 (0x8d), region = 24 }
  0x17   : > { %p614_p12 = pnand %p621_p9, %p613_p11 }
  0x19   : > { %616 = dma.hbm_to_vmem [thread:$0]  (!%p614_p12), %s88_s26, 16000, %s90_s28, [#allocation5], %s774_s29, %s774_s29, %s775_s30  }
  0x1b   : > { %749 = dma.done.wait (%p621_p9), [#allocation5], 16000  }
  0x1c   : > { %751 = vsyncadd (%p621_p9), [#allocation5], 4294951296  ;;  %s978_s3 = sand.u32 1, %s762_s14   ;;  %s854_s4 = sshll.u32 %s815_s0, 6 }
  0x1d   : > { %s122_s5 = sld [smem:[#allocation3 + %s854_s4]]  ;;  %s859_s6 = sshll.u32 %s978_s3, 3 }
  0x1e   : > { %s126_s7 = sadd.s32 1, %s854_s4  ;;  %s131_s9 = sadd.s32 2, %s854_s4 }
  0x1f   : > { %s127_s8 = sld [smem:[#allocation3 + %s126_s7]]  ;;  %s136_s11 = sadd.s32 3, %s854_s4 }
  0x20   : > { %s132_s10 = sld [smem:[#allocation3 + %s131_s9]]  ;;  %s141_s17 = sadd.s32 4, %s854_s4 }
  0x21   : > { %s137_s12 = sld [smem:[#allocation3 + %s136_s11]]  ;;  %s146_s20 = sadd.s32 5, %s854_s4 }
  0x22   : > { %s142_s19 = sld [smem:[#allocation3 + %s141_s17]]  ;;  %s151_s26 = sadd.s32 6, %s854_s4 }
  0x23   : > { %s147_s24 = sld [smem:[#allocation3 + %s146_s20]]  ;;  %s123_s25 = scalar_lea.vmem [#allocation4], %s122_s5 }
  0x24   : > { %v124_v0 = vld [vmem:[%s123_s25] sm:$0x1]  ;;  %s156_s27 = sadd.s32 7, %s854_s4  ;;  %s152_s28 = sld [smem:[#allocation3 + %s151_s26]] }
  0x25   : > { %s128_s29 = scalar_lea.vmem [#allocation4], %s127_s8  ;;  %s157_s30 = sld [smem:[#allocation3 + %s156_s27]] }
  0x26   : > { %v129_v1 = vld [vmem:[%s128_s29] sm:$0x1]  ;;  %s133_s7 = scalar_lea.vmem [#allocation4], %s132_s10  ;;  %s163_s11 = sadd.s32 8, %s854_s4 }
  0x27   : > { %v130_v2 = vadd.f32 %v129_v1, %v124_v0  ;;  %v134_v3 = vld [vmem:[%s133_s7] sm:$0x1]  ;;  %s138_s9 = scalar_lea.vmem [#allocation4], %s137_s12  ;;  %s164_s17 = sld [smem:[#allocation3 + %s163_s11]] }
  0x28   : > { %v139_v4 = vld [vmem:[%s138_s9] sm:$0x1]  ;;  %s143_s5 = scalar_lea.vmem [#allocation4], %s142_s19  ;;  %s168_s20 = sadd.s32 9, %s854_s4 }
  0x29   : > { %v135_v5 = vadd.f32 %v134_v3, %v130_v2  ;;  %v144_v6 = vld [vmem:[%s143_s5] sm:$0x1]  ;;  %s173_s25 = sadd.s32 10, %s854_s4  ;;  %s169_s26 = sld [smem:[#allocation3 + %s168_s20]] }
  0x2a   : > { %s148_s8 = scalar_lea.vmem [#allocation4], %s147_s24  ;;  %s174_s27 = sld [smem:[#allocation3 + %s173_s25]] }
  0x2b   : > { %v140_v7 = vadd.f32 %v139_v4, %v135_v5  ;;  %v149_v8 = vld [vmem:[%s148_s8] sm:$0x1]  ;;  %s178_s10 = sadd.s32 11, %s854_s4  ;;  %s183_s29 = sadd.s32 12, %s854_s4 }
  0x2c   : > { %s153_s12 = scalar_lea.vmem [#allocation4], %s152_s28  ;;  %s179_s7 = sld [smem:[#allocation3 + %s178_s10]] }
  0x2d   : > { %v145_v9 = vadd.f32 %v144_v6, %v140_v7  ;;  %v154_v10 = vld [vmem:[%s153_s12] sm:$0x1]  ;;  %s188_s9 = sadd.s32 13, %s854_s4  ;;  %s184_s11 = sld [smem:[#allocation3 + %s183_s29]] }
  0x2e   : > { %s158_s19 = scalar_lea.vmem [#allocation4], %s157_s30  ;;  %s165_s5 = scalar_lea.vmem [#allocation4], %s164_s17 }
  0x2f   : > { %v150_v11 = vadd.f32 %v149_v8, %v145_v9  ;;  %v159_v12 = vld [vmem:[%s158_s19] sm:$0x1]  ;;  %s189_s20 = sld [smem:[#allocation3 + %s188_s9]]  ;;  %s193_s24 = sadd.s32 14, %s854_s4 }
  0x30   : > { %v166_v13 = vld [vmem:[%s165_s5] sm:$0x1]  ;;  %s875_s25 = sld [smem:[#allocation3 + %s193_s24]]  ;;  %s170_s8 = scalar_lea.vmem [#allocation4], %s169_s26 }
  0x31   : > { %v155_v14 = vadd.f32 %v154_v10, %v150_v11  ;;  %v171_v15 = vld [vmem:[%s170_s8] sm:$0x1]  ;;  %s198_s28 = sadd.s32 15, %s854_s4  ;;  %s175_s10 = scalar_lea.vmem [#allocation4], %s174_s27 }
  0x32   : > { %v172_v17 = vadd.f32 %v171_v15, %v166_v13  ;;  %v176_v18 = vld [vmem:[%s175_s10] sm:$0x1]  ;;  %s878_s30 = sld [smem:[#allocation3 + %s198_s28]]  ;;  %s205_s29 = sadd.s32 16, %s854_s4 }
  0x33   : > { %v160_v16 = vadd.f32 %v159_v12, %v155_v14  ;;  %s206_s17 = sld [smem:[#allocation3 + %s205_s29]]  ;;  %s180_s12 = scalar_lea.vmem [#allocation4], %s179_s7 }
  0x34   : > { %v177_v20 = vadd.f32 %v176_v18, %v172_v17  ;;  %v181_v21 = vld [vmem:[%s180_s12] sm:$0x1]  ;;  %s210_s9 = sadd.s32 17, %s854_s4  ;;  %s185_s26 = scalar_lea.vmem [#allocation4], %s184_s11 }
  0x35   : > { %v161_v19 = vmul.f32 0.125, %v160_v16  ;;  %v186_v22 = vld [vmem:[%s185_s26] sm:$0x1]  ;;  %s211_s19 = sld [smem:[#allocation3 + %s210_s9]]  ;;  %s883_s5 = scalar_lea.vmem [#allocation7], %s859_s6 }
  0x36   : > { %v182_v23 = vadd.f32 %v181_v21, %v177_v20  ;;  %s215_s27 = sadd.s32 18, %s854_s4  ;;  %s190_s24 = scalar_lea.vmem [#allocation4], %s189_s20 }
  0x37   : > { %162 = vst [vmem:[%s883_s5] sm:$0x1] %v161_v19  ;;  %v191_v24 = vld [vmem:[%s190_s24] sm:$0x1]  ;;  %s216_s8 = sld [smem:[#allocation3 + %s215_s27]]  ;;  %s220_s28 = sadd.s32 19, %s854_s4 }
  0x38   : > { %v187_v25 = vadd.f32 %v186_v22, %v182_v23  ;;  %s221_s7 = sld [smem:[#allocation3 + %s220_s28]]  ;;  %s195_s10 = scalar_lea.vmem [#allocation4], %s875_s25 }
  0x39   : > { %v196_v26 = vld [vmem:[%s195_s10] sm:$0x1]  ;;  %s225_s11 = sadd.s32 20, %s854_s4  ;;  %s207_s6 = scalar_lea.vmem [#allocation4], %s206_s17 }
  0x3a   : > { %v192_v27 = vadd.f32 %v191_v24, %v187_v25  ;;  %v208_v28 = vld [vmem:[%s207_s6] sm:$0x1]  ;;  %s226_s29 = sld [smem:[#allocation3 + %s225_s11]]  ;;  %s230_s12 = sadd.s32 21, %s854_s4 }
  0x3b   : > { %s200_s9 = scalar_lea.vmem [#allocation4], %s878_s30  ;;  %s231_s26 = sld [smem:[#allocation3 + %s230_s12]] }
  0x3c   : > { %v201_v29 = vld [vmem:[%s200_s9] sm:$0x1]  ;;  %v197_v30 = vadd.f32 %v196_v26, %v192_v27  ;;  %s212_s20 = scalar_lea.vmem [#allocation4], %s211_s19  ;;  %s235_s27 = sadd.s32 22, %s854_s4 }
  0x3d   : > { %v213_v31 = vld [vmem:[%s212_s20] sm:$0x1]  ;;  %s240_s24 = sadd.s32 23, %s854_s4  ;;  %s236_s28 = sld [smem:[#allocation3 + %s235_s27]] }
  0x3e   : > { %v214_v32 = vadd.f32 %v213_v31, %v208_v28  ;;  %v202_v33 = vadd.f32 %v201_v29, %v197_v30  ;;  %s217_s25 = scalar_lea.vmem [#allocation4], %s216_s8  ;;  %s241_s17 = sld [smem:[#allocation3 + %s240_s24]] }
  0x3f   : > { %v218_v34 = vld [vmem:[%s217_s25] sm:$0x1]  ;;  %s222_s30 = scalar_lea.vmem [#allocation4], %s221_s7  ;;  %s247_s10 = sadd.s32 24, %s854_s4 }
  0x40   : > { %v219_v35 = vadd.f32 %v218_v34, %v214_v32  ;;  %v223_v36 = vld [vmem:[%s222_s30] sm:$0x1]  ;;  %s252_s11 = sadd.s32 25, %s854_s4  ;;  %v203_v37 = vmul.f32 0.125, %v202_v33  ;;  %s248_s6 = sld [smem:[#allocation3 + %s247_s10]] }
  0x41   : > { %s227_s19 = scalar_lea.vmem [#allocation4], %s226_s29  ;;  %s253_s12 = sld [smem:[#allocation3 + %s252_s11]] }
  0x42   : > { %v224_v38 = vadd.f32 %v223_v36, %v219_v35  ;;  %v228_v39 = vld [vmem:[%s227_s19] sm:$0x1]  ;;  %204 = vst [vmem:[%s883_s5 + $0x1] sm:$0x1] %v203_v37  ;;  %s232_s9 = scalar_lea.vmem [#allocation4], %s231_s26  ;;  %s257_s8 = sadd.s32 26, %s854_s4 }
  0x43   : > { %v233_v40 = vld [vmem:[%s232_s9] sm:$0x1]  ;;  %s262_s20 = sadd.s32 27, %s854_s4  ;;  %s258_s27 = sld [smem:[#allocation3 + %s257_s8]] }
  0x44   : > { %v229_v41 = vadd.f32 %v228_v39, %v224_v38  ;;  %s237_s7 = scalar_lea.vmem [#allocation4], %s236_s28  ;;  %s263_s24 = sld [smem:[#allocation3 + %s262_s20]] }
  0x45   : > { %v238_v42 = vld [vmem:[%s237_s7] sm:$0x1]  ;;  %s267_s25 = sadd.s32 28, %s854_s4  ;;  %s272_s30 = sadd.s32 29, %s854_s4 }
  0x46   : > { %v234_v43 = vadd.f32 %v233_v40, %v229_v41  ;;  %s242_s10 = scalar_lea.vmem [#allocation4], %s241_s17  ;;  %s268_s29 = sld [smem:[#allocation3 + %s267_s25]] }
  0x47   : > { %v243_v44 = vld [vmem:[%s242_s10] sm:$0x1]  ;;  %s249_s11 = scalar_lea.vmem [#allocation4], %s248_s6  ;;  %s273_s26 = sld [smem:[#allocation3 + %s272_s30]] }
  0x48   : > { %v239_v45 = vadd.f32 %v238_v42, %v234_v43  ;;  %v250_v46 = vld [vmem:[%s249_s11] sm:$0x1]  ;;  %s254_s19 = scalar_lea.vmem [#allocation4], %s253_s12  ;;  %s277_s9 = sadd.s32 30, %s854_s4 }
  0x49   : > { %v255_v47 = vld [vmem:[%s254_s19] sm:$0x1]  ;;  %s282_s28 = sadd.s32 31, %s854_s4  ;;  %s278_s8 = sld [smem:[#allocation3 + %s277_s9]] }
  0x4a   : > { %v244_v48 = vadd.f32 %v243_v44, %v239_v45  ;;  %v256_v49 = vadd.f32 %v255_v47, %v250_v46  ;;  %s259_s20 = scalar_lea.vmem [#allocation4], %s258_s27  ;;  %s283_s17 = sld [smem:[#allocation3 + %s282_s28]] }
  0x4b   : > { %v260_v50 = vld [vmem:[%s259_s20] sm:$0x1]  ;;  %s264_s6 = scalar_lea.vmem [#allocation4], %s263_s24  ;;  %s289_s7 = sadd.s32 32, %s854_s4 }
  0x4c   : > { %v245_v51 = vmul.f32 0.125, %v244_v48  ;;  %v261_v52 = vadd.f32 %v260_v50, %v256_v49  ;;  %v265_v53 = vld [vmem:[%s264_s6] sm:$0x1]  ;;  %s294_s25 = sadd.s32 33, %s854_s4  ;;  %s290_s30 = sld [smem:[#allocation3 + %s289_s7]] }
  0x4d   : > { %s269_s12 = scalar_lea.vmem [#allocation4], %s268_s29  ;;  %s295_s10 = sld [smem:[#allocation3 + %s294_s25]] }
  0x4e   : > { %246 = vst [vmem:[%s883_s5 + $0x2] sm:$0x1] %v245_v51  ;;  %v266_v54 = vadd.f32 %v265_v53, %v261_v52  ;;  %v270_v55 = vld [vmem:[%s269_s12] sm:$0x1]  ;;  %s274_s11 = scalar_lea.vmem [#allocation4], %s273_s26  ;;  %s299_s27 = sadd.s32 34, %s854_s4 }
  0x4f   : > { %v275_v56 = vld [vmem:[%s274_s11] sm:$0x1]  ;;  %s304_s19 = sadd.s32 35, %s854_s4  ;;  %s300_s9 = sld [smem:[#allocation3 + %s299_s27]] }
  0x50   : > { %v271_v57 = vadd.f32 %v270_v55, %v266_v54  ;;  %s279_s28 = scalar_lea.vmem [#allocation4], %s278_s8  ;;  %s305_s24 = sld [smem:[#allocation3 + %s304_s19]] }
  0x51   : > { %v280_v58 = vld [vmem:[%s279_s28] sm:$0x1]  ;;  %s309_s20 = sadd.s32 36, %s854_s4  ;;  %s314_s6 = sadd.s32 37, %s854_s4 }
  0x52   : > { %v276_v59 = vadd.f32 %v275_v56, %v271_v57  ;;  %s284_s7 = scalar_lea.vmem [#allocation4], %s283_s17  ;;  %s310_s3 = sld [smem:[#allocation3 + %s309_s20]] }
  0x53   : > { %v285_v60 = vld [vmem:[%s284_s7] sm:$0x1]  ;;  %s291_s29 = scalar_lea.vmem [#allocation4], %s290_s30  ;;  %s315_s26 = sld [smem:[#allocation3 + %s314_s6]] }
  0x54   : > { %v281_v61 = vadd.f32 %v280_v58, %v276_v59  ;;  %v292_v62 = vld [vmem:[%s291_s29] sm:$0x1]  ;;  %s296_s25 = scalar_lea.vmem [#allocation4], %s295_s10  ;;  %s319_s12 = sadd.s32 38, %s854_s4 }
  0x55   : > { %v297_v63 = vld [vmem:[%s296_s25] sm:$0x1]  ;;  %s324_s8 = sadd.s32 39, %s854_s4  ;;  %s320_s11 = sld [smem:[#allocation3 + %s319_s12]] }
  0x56   : > { %v286_v0 = vadd.f32 %v285_v60, %v281_v61  ;;  %v298_v1 = vadd.f32 %v297_v63, %v292_v62  ;;  %s301_s27 = scalar_lea.vmem [#allocation4], %s300_s9  ;;  %s325_s17 = sld [smem:[#allocation3 + %s324_s8]] }
  0x57   : > { %v302_v2 = vld [vmem:[%s301_s27] sm:$0x1]  ;;  %s306_s30 = scalar_lea.vmem [#allocation4], %s305_s24  ;;  %s331_s19 = sadd.s32 40, %s854_s4 }
  0x58   : > { %v287_v3 = vmul.f32 0.125, %v286_v0  ;;  %v303_v4 = vadd.f32 %v302_v2, %v298_v1  ;;  %v307_v5 = vld [vmem:[%s306_s30] sm:$0x1]  ;;  %s336_s28 = sadd.s32 41, %s854_s4  ;;  %s332_s20 = sld [smem:[#allocation3 + %s331_s19]] }
  0x59   : > { %s311_s10 = scalar_lea.vmem [#allocation4], %s310_s3  ;;  %s337_s6 = sld [smem:[#allocation3 + %s336_s28]] }
  0x5a   : > { %288 = vst [vmem:[%s883_s5 + $0x3] sm:$0x1] %v287_v3  ;;  %v308_v6 = vadd.f32 %v307_v5, %v303_v4  ;;  %v312_v7 = vld [vmem:[%s311_s10] sm:$0x1]  ;;  %s316_s7 = scalar_lea.vmem [#allocation4], %s315_s26  ;;  %s341_s9 = sadd.s32 42, %s854_s4 }
  0x5b   : > { %v317_v8 = vld [vmem:[%s316_s7] sm:$0x1]  ;;  %s346_s29 = sadd.s32 43, %s854_s4  ;;  %s342_s25 = sld [smem:[#allocation3 + %s341_s9]] }
  0x5c   : > { %v313_v9 = vadd.f32 %v312_v7, %v308_v6  ;;  %s321_s12 = scalar_lea.vmem [#allocation4], %s320_s11  ;;  %s347_s24 = sld [smem:[#allocation3 + %s346_s29]] }
  0x5d   : > { %v322_v10 = vld [vmem:[%s321_s12] sm:$0x1]  ;;  %s351_s8 = sadd.s32 44, %s854_s4  ;;  %s356_s27 = sadd.s32 45, %s854_s4 }
  0x5e   : > { %v318_v11 = vadd.f32 %v317_v8, %v313_v9  ;;  %s326_s30 = scalar_lea.vmem [#allocation4], %s325_s17  ;;  %s352_s19 = sld [smem:[#allocation3 + %s351_s8]] }
  0x5f   : > { %v327_v12 = vld [vmem:[%s326_s30] sm:$0x1]  ;;  %s333_s3 = scalar_lea.vmem [#allocation4], %s332_s20  ;;  %s357_s26 = sld [smem:[#allocation3 + %s356_s27]] }
  0x60   : > { %v323_v13 = vadd.f32 %v322_v10, %v318_v11  ;;  %v334_v14 = vld [vmem:[%s333_s3] sm:$0x1]  ;;  %s338_s28 = scalar_lea.vmem [#allocation4], %s337_s6  ;;  %s361_s10 = sadd.s32 46, %s854_s4 }
  0x61   : > { %v339_v15 = vld [vmem:[%s338_s28] sm:$0x1]  ;;  %s366_s11 = sadd.s32 47, %s854_s4  ;;  %s362_s7 = sld [smem:[#allocation3 + %s361_s10]] }
  0x62   : > { %v328_v16 = vadd.f32 %v327_v12, %v323_v13  ;;  %v340_v17 = vadd.f32 %v339_v15, %v334_v14  ;;  %s343_s9 = scalar_lea.vmem [#allocation4], %s342_s25  ;;  %s367_s17 = sld [smem:[#allocation3 + %s366_s11]] }
  0x63   : > { %v344_v18 = vld [vmem:[%s343_s9] sm:$0x1]  ;;  %s348_s20 = scalar_lea.vmem [#allocation4], %s347_s24  ;;  %s373_s29 = sadd.s32 48, %s854_s4 }
  0x64   : > { %v329_v19 = vmul.f32 0.125, %v328_v16  ;;  %v345_v20 = vadd.f32 %v344_v18, %v340_v17  ;;  %v349_v21 = vld [vmem:[%s348_s20] sm:$0x1]  ;;  %s378_s12 = sadd.s32 49, %s854_s4  ;;  %s374_s8 = sld [smem:[#allocation3 + %s373_s29]] }
  0x65   : > { %s353_s6 = scalar_lea.vmem [#allocation4], %s352_s19  ;;  %s379_s27 = sld [smem:[#allocation3 + %s378_s12]] }
  0x66   : > { %330 = vst [vmem:[%s883_s5 + $0x4] sm:$0x1] %v329_v19  ;;  %v350_v22 = vadd.f32 %v349_v21, %v345_v20  ;;  %v354_v23 = vld [vmem:[%s353_s6] sm:$0x1]  ;;  %s358_s30 = scalar_lea.vmem [#allocation4], %s357_s26  ;;  %s383_s25 = sadd.s32 50, %s854_s4 }
  0x67   : > { %v359_v24 = vld [vmem:[%s358_s30] sm:$0x1]  ;;  %s388_s3 = sadd.s32 51, %s854_s4  ;;  %s384_s28 = sld [smem:[#allocation3 + %s383_s25]] }
  0x68   : > { %v355_v25 = vadd.f32 %v354_v23, %v350_v22  ;;  %s363_s10 = scalar_lea.vmem [#allocation4], %s362_s7  ;;  %s389_s24 = sld [smem:[#allocation3 + %s388_s3]] }
  0x69   : > { %v364_v26 = vld [vmem:[%s363_s10] sm:$0x1]  ;;  %s393_s11 = sadd.s32 52, %s854_s4  ;;  %s398_s9 = sadd.s32 53, %s854_s4 }
  0x6a   : > { %v360_v27 = vadd.f32 %v359_v24, %v355_v25  ;;  %s368_s20 = scalar_lea.vmem [#allocation4], %s367_s17  ;;  %s394_s29 = sld [smem:[#allocation3 + %s393_s11]] }
  0x6b   : > { %v369_v28 = vld [vmem:[%s368_s20] sm:$0x1]  ;;  %s375_s19 = scalar_lea.vmem [#allocation4], %s374_s8  ;;  %s399_s26 = sld [smem:[#allocation3 + %s398_s9]] }
  0x6c   : > { %v365_v29 = vadd.f32 %v364_v26, %v360_v27  ;;  %v376_v30 = vld [vmem:[%s375_s19] sm:$0x1]  ;;  %s380_s12 = scalar_lea.vmem [#allocation4], %s379_s27  ;;  %s403_s6 = sadd.s32 54, %s854_s4 }
  0x6d   : > { %v381_v31 = vld [vmem:[%s380_s12] sm:$0x1]  ;;  %s408_s7 = sadd.s32 55, %s854_s4  ;;  %s404_s30 = sld [smem:[#allocation3 + %s403_s6]] }
  0x6e   : > { %v370_v32 = vadd.f32 %v369_v28, %v365_v29  ;;  %v382_v33 = vadd.f32 %v381_v31, %v376_v30  ;;  %s385_s25 = scalar_lea.vmem [#allocation4], %s384_s28  ;;  %s409_s17 = sld [smem:[#allocation3 + %s408_s7]] }
  0x6f   : > { %v386_v34 = vld [vmem:[%s385_s25] sm:$0x1]  ;;  %s390_s8 = scalar_lea.vmem [#allocation4], %s389_s24  ;;  %s415_s3 = sadd.s32 56, %s854_s4 }
  0x70   : > { %v371_v35 = vmul.f32 0.125, %v370_v32  ;;  %v387_v36 = vadd.f32 %v386_v34, %v382_v33  ;;  %v391_v37 = vld [vmem:[%s390_s8] sm:$0x1]  ;;  %s420_s10 = sadd.s32 57, %s854_s4  ;;  %s416_s11 = sld [smem:[#allocation3 + %s415_s3]] }
  0x71   : > { %s395_s27 = scalar_lea.vmem [#allocation4], %s394_s29  ;;  %s421_s9 = sld [smem:[#allocation3 + %s420_s10]] }
  0x72   : > { %372 = vst [vmem:[%s883_s5 + $0x5] sm:$0x1] %v371_v35  ;;  %v392_v38 = vadd.f32 %v391_v37, %v387_v36  ;;  %v396_v39 = vld [vmem:[%s395_s27] sm:$0x1]  ;;  %s400_s20 = scalar_lea.vmem [#allocation4], %s399_s26  ;;  %s425_s28 = sadd.s32 58, %s854_s4 }
  0x73   : > { %v401_v40 = vld [vmem:[%s400_s20] sm:$0x1]  ;;  %s430_s19 = sadd.s32 59, %s854_s4  ;;  %s426_s12 = sld [smem:[#allocation3 + %s425_s28]] }
  0x74   : > { %v397_v41 = vadd.f32 %v396_v39, %v392_v38  ;;  %s405_s6 = scalar_lea.vmem [#allocation4], %s404_s30  ;;  %s431_s24 = sld [smem:[#allocation3 + %s430_s19]] }
  0x75   : > { %v406_v42 = vld [vmem:[%s405_s6] sm:$0x1]  ;;  %s435_s7 = sadd.s32 60, %s854_s4  ;;  %s440_s25 = sadd.s32 61, %s854_s4 }
  0x76   : > { %v402_v43 = vadd.f32 %v401_v40, %v397_v41  ;;  %s410_s8 = scalar_lea.vmem [#allocation4], %s409_s17  ;;  %s436_s3 = sld [smem:[#allocation3 + %s435_s7]] }
  0x77   : > { %v411_v44 = vld [vmem:[%s410_s8] sm:$0x1]  ;;  %s417_s29 = scalar_lea.vmem [#allocation4], %s416_s11  ;;  %s441_s26 = sld [smem:[#allocation3 + %s440_s25]] }
  0x78   : > { %v407_v45 = vadd.f32 %v406_v42, %v402_v43  ;;  %v418_v46 = vld [vmem:[%s417_s29] sm:$0x1]  ;;  %s422_s10 = scalar_lea.vmem [#allocation4], %s421_s9  ;;  %s445_s27 = sadd.s32 62, %s854_s4 }
  0x79   : > { %v423_v47 = vld [vmem:[%s422_s10] sm:$0x1]  ;;  %s450_s20 = sadd.s32 63, %s854_s4  ;;  %s446_s30 = sld [smem:[#allocation3 + %s445_s27]] }
  0x7a   : > { %v412_v48 = vadd.f32 %v411_v44, %v407_v45  ;;  %v424_v49 = vadd.f32 %v423_v47, %v418_v46  ;;  %s427_s28 = scalar_lea.vmem [#allocation4], %s426_s12  ;;  %s451_s19 = sld [smem:[#allocation3 + %s450_s20]] }
  0x7b   : > { %v428_v50 = vld [vmem:[%s427_s28] sm:$0x1]  ;;  %s432_s17 = scalar_lea.vmem [#allocation4], %s431_s24  ;;  %s604_s4 = sshll.u32 %s815_s0, 3 }
  0x7c   : > { %v413_v51 = vmul.f32 0.125, %v412_v48  ;;  %v429_v52 = vadd.f32 %v428_v50, %v424_v49  ;;  %v433_v53 = vld [vmem:[%s432_s17] sm:$0x1]  ;;  %s437_s11 = scalar_lea.vmem [#allocation4], %s436_s3  ;;  %s468_s25 = scalar_lea.hbm %s977_s2, %s604_s4 }
  0x7d   : > { %v438_v55 = vld [vmem:[%s437_s11] sm:$0x1]  ;;  %s442_s9 = scalar_lea.vmem [#allocation4], %s441_s26  ;;  %s470_s8 = sshll.u32 %s883_s5, 4  ;;  %s471_s8 = int_to_ptr.vmem [resolvable:$true] %s470_s8 }
  0x7e   : > { %414 = vst [vmem:[%s883_s5 + $0x6] sm:$0x1] %v413_v51  ;;  %v434_v54 = vadd.f32 %v433_v53, %v429_v52  ;;  %v443_v56 = vld [vmem:[%s442_s9] sm:$0x1]  ;;  %s472_s3 = sshll.u32 %s468_s25, 4  ;;  %s981_s0 = sand.u32 1, %s762_s14   ;;  %s473_s3 = int_to_ptr.hbm [resolvable:$true] %s472_s3 }
  0x7f   : > { %s447_s6 = scalar_lea.vmem [#allocation4], %s446_s30  ;;  %s458_s29 = scalar_lea.sflag [#allocation6], %s981_s0 }
  0x80   : > { %v439_v57 = vadd.f32 %v438_v55, %v434_v54  ;;  %v448_v58 = vld [vmem:[%s447_s6] sm:$0x1]  ;;  %s452_s24 = scalar_lea.vmem [#allocation4], %s451_s19  ;;  %s716_s26 = sshra.s32 %s473_s3, 4  ;;  %s717_s26 = int_to_ptr.hbm [resolvable:$true] %s716_s26 }
  0x81   : > { %v453_v60 = vld [vmem:[%s452_s24] sm:$0x1]  ;;  %s718_s10 = scalar_lea.hbm %s717_s26, 8  ;;  %s722_s30 = scalar_lea.hbm %s977_s2, 16 }
  0x82   : > { %v444_v59 = vadd.f32 %v443_v56, %v439_v57  ;;  %p719_p13 = scmp.ne.s32.totalorder %s717_s26, %s718_s10  ;;  %p723_p2 = scmp.lt.s32.totalorder %s717_s26, %s977_s2 }
  0x83   : > { %p724_p3 = scmp.lt.s32.totalorder %s722_s30, %s718_s10 }
  0x84   : > { %v449_v61 = vadd.f32 %v448_v58, %v444_v59  ;;  %p720_p0 = pnand %p719_p13, %p832_p5 }
  0x85   : > { %p725_p4 = por %p724_p3, %p723_p2 }
  0x86   : > { %v454_v62 = vadd.f32 %v453_v60, %v449_v61  ;;  %p721_p1 = pneg %p720_p0 }
  0x88   : > { %v455_v63 = vmul.f32 0.125, %v454_v62  ;;  %p726_p7 = pnand %p725_p4, %p721_p1 }
  0x8a   : > { %456 = vst [vmem:[%s883_s5 + $0x7] sm:$0x1] %v455_v63 }
  0x8b   : > { %729 = shalt.err (!%p726_p7)
}
  0x8c   : > { %611 = dma.vmem_to_hbm [thread:$0]  (%p832_p5), %s471_s8, 128, %s473_s3, %s458_s29  }
  0x8d PF: > { %p623_p8 = scmp.ge.s32.totalorder %s770_s16, 2  ;;  %s484_s5 = sand.u32 1, %s758_s13  }
  0x8e   : > { %s485_s17 = scalar_lea.sflag [#allocation6], %s484_s5 }
  0x8f   : > { %p618_p9 = pnand %p623_p8, %p836_p6 }
  0x91   : > { %p619_p10 = pneg %p618_p9 }
  0x93   : > { %753 = dma.done.wait (%p619_p10), %s485_s17, 128  }
  0x94   : > { %755 = vsyncadd (%p619_p10), %s485_s17, 4294967168  ;;  %p21_p11 = scmp.ge.s32.totalorder %s819_s18, 4   ;;  %s982_s13 = smov %s762_s14 }
  0x95   : > { %s983_s14 = smov %s766_s15  ;;  %s984_s15 = smov %s830_s21 }
  0x96   : > { %s985_s16 = smov %s819_s18  ;;  %23 = sbr.rel (!%p21_p11) target bundleno = 10 (0xa), region = 125 }
  0x9b   :  { %491 = vsyncpa [#allocation5], 1 }
  0x9c   :  { %493 = vsyncpa [#allocation5 + $0x1], 1 }
  0x9d   :  { %494 = vsyncpa [#allocation6], 1 }
  0x9e   :  { %496 = vsyncpa [#allocation6 + $0x1], 1 }

</bundles_post_ra>
